<compile_context>
chip_gen: v5e
topology: v5e:2x2
jax: 0.10.0
libtpu: 0.0.40
codegen_flags: <defaults>
</compile_context>

<pallas_src>
import functools

import jax
import jax.numpy as jnp
from jax.experimental import pallas as pl
from jax.experimental.pallas import tpu as pltpu


# --------------------- parameters (PyTorch layouts, synthetic) ---------------------

def init_params(key, input_shape, layer_sizes, latent_size, ts_len):
    """Parameters in PyTorch layouts: Conv1d weight (Cout, Cin, 3), Linear weight (out, in)."""
    T, F = input_shape
    keys = iter(jax.random.split(key, 32))

    def norm(shape, scale=0.1):
        return (scale * jax.random.normal(next(keys), shape)).astype(jnp.float32)

    enc_ch = [F, *layer_sizes]                     # encoder conv channels: F -> layer_sizes
    dec_first = F + latent_size
    dec_ch = [dec_first, *layer_sizes[::-1]]       # decoder conv channels (reversed)
    out_rows = T - ts_len

    return {
        "enc_convs": [(norm((co, ci, 3)), norm((co,), 0.01))
                      for ci, co in zip(enc_ch[:-1], enc_ch[1:])],
        "fc_mu_w": norm((latent_size, enc_ch[-1])),
        "fc_mu_b": norm((latent_size,), 0.01),
        "dec_fc_in_w": norm((dec_first * ts_len, F * ts_len + latent_size)),
        "dec_fc_in_b": norm((dec_first * ts_len,), 0.01),
        "dec_convs": [(norm((co, ci, 3)), norm((co,), 0.01))
                      for ci, co in zip(dec_ch[:-1], dec_ch[1:])],
        "dec_fc_out_w": norm((out_rows * F, dec_ch[-1] * ts_len)),
        "dec_fc_out_b": norm((out_rows * F,), 0.01),
    }


# --------------- lower module params to the fused right-multiply form ---------------

def _conv1d_to_matmul(w, b, L):
    """Lower Conv1d(k=3, padding=1) to one right-multiply matmul on flat (B, Cin*L) slabs.

    M[ci*L + t_in, co*L + t_out] = w[co, ci, t_in - t_out + 1] for |t_in - t_out| <= 1, else 0
    (zero padding), so relu(x_flat @ M + bias_row) == Conv1d(k=3, pad=1)+ReLU per sample.
    """
    # TODO(synk): switch to im2col / 3-shifted-dots (pltpu.roll) once L grows past a few tens;
    #             the dense Toeplitz form has O(L) extra FLOPs and O(L^2) weight bytes.
    _, _, K = w.shape
    M = jnp.zeros((w.shape[1] * L, w.shape[0] * L), jnp.float32)
    for tap in range(K):
        M = M + jnp.kron(w[:, :, tap].T, jnp.eye(L, L, k=1 - tap, dtype=jnp.float32))
    return M.astype(jnp.bfloat16), jnp.repeat(b, L)[None, :].astype(jnp.float32)


def prepare_params(tp, *, T, F, ts_len):
    """Convert PyTorch-layout params into the fused kernel's matmul operands.

    Weight matrices are stored in bf16 (single-pass MXU, half the DMA/VMEM); biases stay f32.
    """
    bf16, f32 = jnp.bfloat16, jnp.float32
    kp = {"enc": [_conv1d_to_matmul(w, b, T) for w, b in tp["enc_convs"]]}
    # mean-over-time pooling is linear -> fold it into fc_mu:  mu = h_flat @ Wmu_eff + b
    kp["mu"] = ((jnp.repeat(tp["fc_mu_w"].T, T, axis=0) / T).astype(bf16),
                tp["fc_mu_b"][None, :].astype(f32))
    win_t = tp["dec_fc_in_w"].T                                 # (F*ts_len + latent, Dj)
    kp["fc_in"] = (win_t[: F * ts_len].astype(bf16), win_t[F * ts_len:].astype(bf16),
                   tp["dec_fc_in_b"][None, :].astype(f32))
    kp["dec"] = [_conv1d_to_matmul(w, b, ts_len) for w, b in tp["dec_convs"]]
    kp["fc_out"] = (tp["dec_fc_out_w"].T.astype(bf16), tp["dec_fc_out_b"][None, :].astype(f32))
    return kp


# -------------------------------- fused Pallas kernel --------------------------------

def _fused_forward_kernel(x_ref, y_ref, *refs, n_enc, n_dec):
    """Whole MMD_CVAE forward for one batch tile; all intermediates stay in VMEM/vregs.

    refs = enc (W,b)*n_enc, (Wmu_eff, bmu), (Win_y, Win_mu, b_in),
           dec (W,b)*n_dec, (Wout, bout), out_ref  with out slab = [y_flat | dec_flat | mu].
    """
    out_ref = refs[-1]
    wrefs = refs[:-1]
    idx = 0

    def take(n):
        nonlocal idx
        vals = tuple(r[...] for r in wrefs[idx:idx + n])
        idx += n
        return vals

    f32, bf16 = jnp.float32, jnp.bfloat16

    def dot(a, w):  # bf16 x bf16 MXU matmul, f32 accumulation -> single MXU pass
        return jnp.dot(a.astype(bf16), w, preferred_element_type=f32)

    # ---- encoder: Conv1d(k=3,p=1)+ReLU stack, one MXU dot per layer ----
    h = x_ref[...]                                              # (bb, F*T) f32, lane-dense
    for _ in range(n_enc):
        w, b = take(2)
        h = jnp.maximum(dot(h, w) + b, 0.0)                     # bias-add / ReLU in f32

    # ---- mean-pool over time fused with fc_mu ----
    w, b = take(2)
    mu = dot(h, w) + b                                          # == self.z  (bb, latent)

    # ---- decoder fc_in on z = cat(y_flat, mu): weight split, no in-kernel concat ----
    y = y_ref[...]                                              # (bb, F*ts_len) f32
    wy, wm, b = take(3)
    hd = jnp.maximum(dot(y, wy) + dot(mu, wm) + b, 0.0)

    # ---- decoder conv stack ----
    for _ in range(n_dec):
        w, b = take(2)
        hd = jnp.maximum(dot(hd, w) + b, 0.0)

    # ---- decoder fc_out + exact sigmoid (matches PyTorch numerics) ----
    w, b = take(2)
    logits = dot(hd, w) + b
    dec = 1.0 / (1.0 + jnp.exp(-logits))

    # ---- torch.cat((y, decoder(z)), 1) + z output, as ONE full-width lane-dense store ----
    out_ref[...] = jnp.concatenate([y, dec, mu], axis=1)


def _round_up(n, m):
    return -(-n // m) * m


def mmd_cvae_forward(kp, x, *, ts_len, batch_tile=None):
    """Fused forward.  x: (B, T, F).  Returns (out (B, T, F), z (B, latent))."""
    B, T, F = x.shape
    if F != ts_len:
        raise ValueError("torch.cat((y, decoder(z)), 1) in the reference requires F == ts_len")
    latent = kp["mu"][0].shape[1]
    y_width = F * ts_len
    slab_width = T * F + latent                                 # [y_flat | dec_flat | mu]

    # Layout plumbing (XLA side): channels-major flattening (index = c*L + t) so the kernel
    # sees lane-dense (B, features) slabs matching the block-Toeplitz conv matrices.
    x_flat = jnp.transpose(x, (0, 2, 1)).reshape(B, F * T)
    y_flat = jnp.transpose(x[:, :ts_len, :], (0, 2, 1)).reshape(B, y_width)

    weights = ([a for wb in kp["enc"] for a in wb] + list(kp["mu"]) + list(kp["fc_in"])
               + [a for wb in kp["dec"] for a in wb] + list(kp["fc_out"]))

    # Batch tile: big MXU-friendly M dim (cap 256 = one v6e/v7x 256-wide MXU pass).
    # For v7x production batches pass batch_tile <= B/2 (multiple of 8) so the "parallel"
    # batch grid has >= 2 steps and shards across both TensorCores; re-sweep on v5e
    # (128x128 MXU, 16 MiB scoped-VMEM default).
    bb = batch_tile if batch_tile is not None else min(256, B if B <= 8 else _round_up(B, 8))
    grid = (pl.cdiv(B, bb),)

    in_specs = ([pl.BlockSpec((bb, F * T), lambda i: (i, 0)),
                 pl.BlockSpec((bb, y_width), lambda i: (i, 0))]
                # Constant-index weights: single-buffered (double-buffering would only waste VMEM).
                + [pl.BlockSpec(w.shape, lambda i: (0, 0), pipeline_mode=pl.Buffered(1))
                   for w in weights])
    out_specs = pl.BlockSpec((bb, slab_width), lambda i: (i, 0))

    # Scoped-VMEM budget: single-buffered weights + double-buffered f32 activation slabs,
    # with 2x headroom; floor 32 MiB, cap 64 MiB (v7x physical VMEM per TC).
    weight_bytes = sum(w.size * w.dtype.itemsize for w in weights)
    act_bytes = 2 * bb * (F * T + y_width + slab_width) * 4
    vmem_limit = int(min(64 * 1024 * 1024,
                         max(32 * 1024 * 1024, 2 * (weight_bytes + act_bytes))))

    kernel = functools.partial(_fused_forward_kernel,
                               n_enc=len(kp["enc"]), n_dec=len(kp["dec"]))
    slab = pl.pallas_call(
        kernel,
        grid=grid,
        in_specs=in_specs,
        out_specs=out_specs,
        out_shape=jax.ShapeDtypeStruct((B, slab_width), jnp.float32),
        compiler_params=pltpu.CompilerParams(
            dimension_semantics=("parallel",), vmem_limit_bytes=vmem_limit),
    )(x_flat, y_flat, *weights)
    return slab[:, :T * F].reshape(B, T, F), slab[:, T * F:]


# ---------------- pure-JAX reference (direct transcription of the PyTorch forward) ----------------

def _ref_conv1d_relu(x_bcl, w, b):
    """PyTorch Conv1d(k=3, padding=1) + ReLU.  x: (B, C, L), w: (Cout, Cin, 3), b: (Cout,)."""
    L = x_bcl.shape[-1]
    xpad = jnp.pad(x_bcl, ((0, 0), (0, 0), (1, 1)))
    out = b[None, :, None]
    for k in range(3):
        out = out + jnp.einsum("oc,bcl->bol", w[:, :, k], xpad[:, :, k:k + L],
                               precision=jax.lax.Precision.HIGHEST)
    return jnp.maximum(out, 0.0)


def ref_forward(tp, x, *, ts_len, latent_size):
    hi = jax.lax.Precision.HIGHEST
    B, T, F = x.shape
    xt = jnp.transpose(x, (0, 2, 1))                            # x.transpose(1, 2)
    y = xt[:, :, :ts_len]                                       # (B, F, ts_len)
    h = xt
    for w, b in tp["enc_convs"]:
        h = _ref_conv1d_relu(h, w, b)
    mu = jnp.dot(h.mean(axis=-1), tp["fc_mu_w"].T, precision=hi) + tp["fc_mu_b"]
    z = jnp.concatenate([y.reshape(B, -1), mu], axis=1)
    hd = jnp.maximum(jnp.dot(z, tp["dec_fc_in_w"].T, precision=hi) + tp["dec_fc_in_b"], 0.0)
    hd = hd.reshape(B, F + latent_size, ts_len)
    for w, b in tp["dec_convs"]:
        hd = _ref_conv1d_relu(hd, w, b)
    dec = jax.nn.sigmoid(jnp.dot(hd.reshape(B, -1), tp["dec_fc_out_w"].T, precision=hi)
                         + tp["dec_fc_out_b"])
    dec = dec.reshape(B, T - ts_len, F)
    return jnp.concatenate([y, dec], axis=1), mu


# ---------------------------------------- main ----------------------------------------

if __name__ == "__main__":
    T, F = 16, 8               # (seq len, n_features); F multiple of 8 keeps sublane tiles full
    layer_sizes = [8, 16]      # conv channel sizes
    latent_size = 8
    ts_len = F                 # reference cat((y, decoder(z)), 1) requires ts_len == n_features
    B = 16                     # with batch_tile=8 -> grid=(2,), exercising the parallel batch grid

    key = jax.random.PRNGKey(0)
    pkey, xkey = jax.random.split(key)
    torch_params = init_params(pkey, (T, F), layer_sizes, latent_size, ts_len)
    kparams = prepare_params(torch_params, T=T, F=F, ts_len=ts_len)
    x = jax.random.uniform(xkey, (B, T, F), dtype=jnp.float32)

    fwd = jax.jit(functools.partial(mmd_cvae_forward, ts_len=ts_len, batch_tile=8))
    out, z = fwd(kparams, x)
    jax.block_until_ready(out)
    jax.block_until_ready(z)

    assert out.shape == (B, T, F), out.shape
    assert z.shape == (B, latent_size), z.shape

    # Cross-check against the straightforward pure-JAX f32 transcription of the module.
    # Tolerances account for bf16 weight/activation storage feeding the MXU (f32 accumulation).
    out_r, z_r = ref_forward(torch_params, x, ts_len=ts_len, latent_size=latent_size)
    err_out = float(jnp.max(jnp.abs(out - out_r)))
    err_z = float(jnp.max(jnp.abs(z - z_r)))
    assert err_out < 5e-2, err_out
    assert err_z < 2e-2, err_z

    print("KERNEL_OK")
</pallas_src>

<mosaic_0001>
module attributes {stable_mosaic.version = 11 : i64} {
  func.func @_fused_forward_kernel(%arg0: i32, %arg1: memref<8x128xf32, #tpu.memory_space<vmem>>, %arg2: memref<8x64xf32, #tpu.memory_space<vmem>>, %arg3: memref<128x128xbf16, #tpu.memory_space<vmem>>, %arg4: memref<1x128xf32, #tpu.memory_space<vmem>>, %arg5: memref<128x256xbf16, #tpu.memory_space<vmem>>, %arg6: memref<1x256xf32, #tpu.memory_space<vmem>>, %arg7: memref<256x8xbf16, #tpu.memory_space<vmem>>, %arg8: memref<1x8xf32, #tpu.memory_space<vmem>>, %arg9: memref<64x128xbf16, #tpu.memory_space<vmem>>, %arg10: memref<8x128xbf16, #tpu.memory_space<vmem>>, %arg11: memref<1x128xf32, #tpu.memory_space<vmem>>, %arg12: memref<128x128xbf16, #tpu.memory_space<vmem>>, %arg13: memref<1x128xf32, #tpu.memory_space<vmem>>, %arg14: memref<128x64xbf16, #tpu.memory_space<vmem>>, %arg15: memref<1x64xf32, #tpu.memory_space<vmem>>, %arg16: memref<64x64xbf16, #tpu.memory_space<vmem>>, %arg17: memref<1x64xf32, #tpu.memory_space<vmem>>, %arg18: memref<8x136xf32, #tpu.memory_space<vmem>>) attributes {dimension_semantics = [#tpu.dimension_semantics<parallel>], iteration_bounds = array<i64: 2>, scalar_prefetch = 0 : i64, scratch_operands = 0 : i64, tpu.core_type = #tpu.core_type<tc>, window_params = [{transform_indices = @transform_0, window_bounds = array<i64: 8, 128>}, {transform_indices = @transform_1, window_bounds = array<i64: 8, 64>}, {pipeline_mode = #tpu.pipeline_mode<synchronous>, transform_indices = @transform_2, window_bounds = array<i64: 128, 128>}, {pipeline_mode = #tpu.pipeline_mode<synchronous>, transform_indices = @transform_3, window_bounds = array<i64: 1, 128>}, {pipeline_mode = #tpu.pipeline_mode<synchronous>, transform_indices = @transform_4, window_bounds = array<i64: 128, 256>}, {pipeline_mode = #tpu.pipeline_mode<synchronous>, transform_indices = @transform_5, window_bounds = array<i64: 1, 256>}, {pipeline_mode = #tpu.pipeline_mode<synchronous>, transform_indices = @transform_6, window_bounds = array<i64: 256, 8>}, {pipeline_mode = #tpu.pipeline_mode<synchronous>, transform_indices = @transform_7, window_bounds = array<i64: 1, 8>}, {pipeline_mode = #tpu.pipeline_mode<synchronous>, transform_indices = @transform_8, window_bounds = array<i64: 64, 128>}, {pipeline_mode = #tpu.pipeline_mode<synchronous>, transform_indices = @transform_9, window_bounds = array<i64: 8, 128>}, {pipeline_mode = #tpu.pipeline_mode<synchronous>, transform_indices = @transform_10, window_bounds = array<i64: 1, 128>}, {pipeline_mode = #tpu.pipeline_mode<synchronous>, transform_indices = @transform_11, window_bounds = array<i64: 128, 128>}, {pipeline_mode = #tpu.pipeline_mode<synchronous>, transform_indices = @transform_12, window_bounds = array<i64: 1, 128>}, {pipeline_mode = #tpu.pipeline_mode<synchronous>, transform_indices = @transform_13, window_bounds = array<i64: 128, 64>}, {pipeline_mode = #tpu.pipeline_mode<synchronous>, transform_indices = @transform_14, window_bounds = array<i64: 1, 64>}, {pipeline_mode = #tpu.pipeline_mode<synchronous>, transform_indices = @transform_15, window_bounds = array<i64: 64, 64>}, {pipeline_mode = #tpu.pipeline_mode<synchronous>, transform_indices = @transform_16, window_bounds = array<i64: 1, 64>}, {transform_indices = @transform_17, window_bounds = array<i64: 8, 136>}]} {
    %c0 = arith.constant 0 : index
    %c0_0 = arith.constant 0 : index
    %0 = vector.load %arg1[%c0, %c0_0] : memref<8x128xf32, #tpu.memory_space<vmem>>, vector<8x128xf32>
    %c0_1 = arith.constant 0 : index
    %c0_2 = arith.constant 0 : index
    %1 = vector.load %arg3[%c0_1, %c0_2] : memref<128x128xbf16, #tpu.memory_space<vmem>>, vector<128x128xbf16>
    %c0_3 = arith.constant 0 : index
    %c0_4 = arith.constant 0 : index
    %2 = vector.load %arg4[%c0_3, %c0_4] : memref<1x128xf32, #tpu.memory_space<vmem>>, vector<1x128xf32>
    %3 = arith.truncf %0 : vector<8x128xf32> to vector<8x128xbf16>
    %cst = arith.constant dense<0.000000e+00> : vector<8x128xf32>
    %4 = tpu.matmul %3, %1, %cst {dimension_numbers = #tpu.dot_dimension_numbers<[1], [0], [0], [1], [0, 0, 1, 1], [], []>} : vector<8x128xbf16>, vector<128x128xbf16>, vector<8x128xf32> -> vector<8x128xf32>
    %5 = vector.broadcast %2 : vector<1x128xf32> to vector<8x128xf32>
    %6 = arith.addf %4, %5 : vector<8x128xf32>
    %cst_5 = arith.constant 0.000000e+00 : f32
    %7 = vector.broadcast %cst_5 : f32 to vector<8x128xf32>
    %8 = arith.maximumf %6, %7 : vector<8x128xf32>
    %c0_6 = arith.constant 0 : index
    %c0_7 = arith.constant 0 : index
    %9 = vector.load %arg5[%c0_6, %c0_7] : memref<128x256xbf16, #tpu.memory_space<vmem>>, vector<128x256xbf16>
    %c0_8 = arith.constant 0 : index
    %c0_9 = arith.constant 0 : index
    %10 = vector.load %arg6[%c0_8, %c0_9] : memref<1x256xf32, #tpu.memory_space<vmem>>, vector<1x256xf32>
    %11 = arith.truncf %8 : vector<8x128xf32> to vector<8x128xbf16>
    %cst_10 = arith.constant dense<0.000000e+00> : vector<8x256xf32>
    %12 = tpu.matmul %11, %9, %cst_10 {dimension_numbers = #tpu.dot_dimension_numbers<[1], [0], [0], [1], [0, 0, 1, 1], [], []>} : vector<8x128xbf16>, vector<128x256xbf16>, vector<8x256xf32> -> vector<8x256xf32>
    %13 = vector.broadcast %10 : vector<1x256xf32> to vector<8x256xf32>
    %14 = arith.addf %12, %13 : vector<8x256xf32>
    %cst_11 = arith.constant 0.000000e+00 : f32
    %15 = vector.broadcast %cst_11 : f32 to vector<8x256xf32>
    %16 = arith.maximumf %14, %15 : vector<8x256xf32>
    %c0_12 = arith.constant 0 : index
    %c0_13 = arith.constant 0 : index
    %17 = vector.load %arg7[%c0_12, %c0_13] : memref<256x8xbf16, #tpu.memory_space<vmem>>, vector<256x8xbf16>
    %c0_14 = arith.constant 0 : index
    %c0_15 = arith.constant 0 : index
    %18 = vector.load %arg8[%c0_14, %c0_15] : memref<1x8xf32, #tpu.memory_space<vmem>>, vector<1x8xf32>
    %19 = arith.truncf %16 : vector<8x256xf32> to vector<8x256xbf16>
    %cst_16 = arith.constant dense<0.000000e+00> : vector<8x8xf32>
    %20 = tpu.matmul %19, %17, %cst_16 {dimension_numbers = #tpu.dot_dimension_numbers<[1], [0], [0], [1], [0, 0, 1, 1], [], []>} : vector<8x256xbf16>, vector<256x8xbf16>, vector<8x8xf32> -> vector<8x8xf32>
    %21 = vector.broadcast %18 : vector<1x8xf32> to vector<8x8xf32>
    %22 = arith.addf %20, %21 : vector<8x8xf32>
    %c0_17 = arith.constant 0 : index
    %c0_18 = arith.constant 0 : index
    %23 = vector.load %arg2[%c0_17, %c0_18] : memref<8x64xf32, #tpu.memory_space<vmem>>, vector<8x64xf32>
    %c0_19 = arith.constant 0 : index
    %c0_20 = arith.constant 0 : index
    %24 = vector.load %arg9[%c0_19, %c0_20] : memref<64x128xbf16, #tpu.memory_space<vmem>>, vector<64x128xbf16>
    %c0_21 = arith.constant 0 : index
    %c0_22 = arith.constant 0 : index
    %25 = vector.load %arg10[%c0_21, %c0_22] : memref<8x128xbf16, #tpu.memory_space<vmem>>, vector<8x128xbf16>
    %c0_23 = arith.constant 0 : index
    %c0_24 = arith.constant 0 : index
    %26 = vector.load %arg11[%c0_23, %c0_24] : memref<1x128xf32, #tpu.memory_space<vmem>>, vector<1x128xf32>
    %27 = arith.truncf %23 : vector<8x64xf32> to vector<8x64xbf16>
    %cst_25 = arith.constant dense<0.000000e+00> : vector<8x128xf32>
    %28 = tpu.matmul %27, %24, %cst_25 {dimension_numbers = #tpu.dot_dimension_numbers<[1], [0], [0], [1], [0, 0, 1, 1], [], []>} : vector<8x64xbf16>, vector<64x128xbf16>, vector<8x128xf32> -> vector<8x128xf32>
    %29 = arith.truncf %22 : vector<8x8xf32> to vector<8x8xbf16>
    %cst_26 = arith.constant dense<0.000000e+00> : vector<8x128xf32>
    %30 = tpu.matmul %29, %25, %cst_26 {dimension_numbers = #tpu.dot_dimension_numbers<[1], [0], [0], [1], [0, 0, 1, 1], [], []>} : vector<8x8xbf16>, vector<8x128xbf16>, vector<8x128xf32> -> vector<8x128xf32>
    %31 = arith.addf %28, %30 : vector<8x128xf32>
    %32 = vector.broadcast %26 : vector<1x128xf32> to vector<8x128xf32>
    %33 = arith.addf %31, %32 : vector<8x128xf32>
    %cst_27 = arith.constant 0.000000e+00 : f32
    %34 = vector.broadcast %cst_27 : f32 to vector<8x128xf32>
    %35 = arith.maximumf %33, %34 : vector<8x128xf32>
    %c0_28 = arith.constant 0 : index
    %c0_29 = arith.constant 0 : index
    %36 = vector.load %arg12[%c0_28, %c0_29] : memref<128x128xbf16, #tpu.memory_space<vmem>>, vector<128x128xbf16>
    %c0_30 = arith.constant 0 : index
    %c0_31 = arith.constant 0 : index
    %37 = vector.load %arg13[%c0_30, %c0_31] : memref<1x128xf32, #tpu.memory_space<vmem>>, vector<1x128xf32>
    %38 = arith.truncf %35 : vector<8x128xf32> to vector<8x128xbf16>
    %cst_32 = arith.constant dense<0.000000e+00> : vector<8x128xf32>
    %39 = tpu.matmul %38, %36, %cst_32 {dimension_numbers = #tpu.dot_dimension_numbers<[1], [0], [0], [1], [0, 0, 1, 1], [], []>} : vector<8x128xbf16>, vector<128x128xbf16>, vector<8x128xf32> -> vector<8x128xf32>
    %40 = vector.broadcast %37 : vector<1x128xf32> to vector<8x128xf32>
    %41 = arith.addf %39, %40 : vector<8x128xf32>
    %cst_33 = arith.constant 0.000000e+00 : f32
    %42 = vector.broadcast %cst_33 : f32 to vector<8x128xf32>
    %43 = arith.maximumf %41, %42 : vector<8x128xf32>
    %c0_34 = arith.constant 0 : index
    %c0_35 = arith.constant 0 : index
    %44 = vector.load %arg14[%c0_34, %c0_35] : memref<128x64xbf16, #tpu.memory_space<vmem>>, vector<128x64xbf16>
    %c0_36 = arith.constant 0 : index
    %c0_37 = arith.constant 0 : index
    %45 = vector.load %arg15[%c0_36, %c0_37] : memref<1x64xf32, #tpu.memory_space<vmem>>, vector<1x64xf32>
    %46 = arith.truncf %43 : vector<8x128xf32> to vector<8x128xbf16>
    %cst_38 = arith.constant dense<0.000000e+00> : vector<8x64xf32>
    %47 = tpu.matmul %46, %44, %cst_38 {dimension_numbers = #tpu.dot_dimension_numbers<[1], [0], [0], [1], [0, 0, 1, 1], [], []>} : vector<8x128xbf16>, vector<128x64xbf16>, vector<8x64xf32> -> vector<8x64xf32>
    %48 = vector.broadcast %45 : vector<1x64xf32> to vector<8x64xf32>
    %49 = arith.addf %47, %48 : vector<8x64xf32>
    %cst_39 = arith.constant 0.000000e+00 : f32
    %50 = vector.broadcast %cst_39 : f32 to vector<8x64xf32>
    %51 = arith.maximumf %49, %50 : vector<8x64xf32>
    %c0_40 = arith.constant 0 : index
    %c0_41 = arith.constant 0 : index
    %52 = vector.load %arg16[%c0_40, %c0_41] : memref<64x64xbf16, #tpu.memory_space<vmem>>, vector<64x64xbf16>
    %c0_42 = arith.constant 0 : index
    %c0_43 = arith.constant 0 : index
    %53 = vector.load %arg17[%c0_42, %c0_43] : memref<1x64xf32, #tpu.memory_space<vmem>>, vector<1x64xf32>
    %54 = arith.truncf %51 : vector<8x64xf32> to vector<8x64xbf16>
    %cst_44 = arith.constant dense<0.000000e+00> : vector<8x64xf32>
    %55 = tpu.matmul %54, %52, %cst_44 {dimension_numbers = #tpu.dot_dimension_numbers<[1], [0], [0], [1], [0, 0, 1, 1], [], []>} : vector<8x64xbf16>, vector<64x64xbf16>, vector<8x64xf32> -> vector<8x64xf32>
    %56 = vector.broadcast %53 : vector<1x64xf32> to vector<8x64xf32>
    %57 = arith.addf %55, %56 : vector<8x64xf32>
    %cst_45 = arith.constant 0.000000e+00 : f32
    %58 = vector.broadcast %cst_45 : f32 to vector<8x64xf32>
    %59 = arith.subf %58, %57 : vector<8x64xf32>
    %60 = math.exp %59 : vector<8x64xf32>
    %cst_46 = arith.constant 1.000000e+00 : f32
    %61 = vector.broadcast %cst_46 : f32 to vector<8x64xf32>
    %62 = arith.addf %61, %60 : vector<8x64xf32>
    %cst_47 = arith.constant 1.000000e+00 : f32
    %63 = vector.broadcast %cst_47 : f32 to vector<8x64xf32>
    %64 = arith.divf %63, %62 : vector<8x64xf32>
    %65 = tpu.concatenate %23, %64, %22 in 1 : vector<8x64xf32>, vector<8x64xf32>, vector<8x8xf32> -> vector<8x136xf32>
    %c0_48 = arith.constant 0 : index
    %c0_49 = arith.constant 0 : index
    %66 = vector.load %arg18[%c0_48, %c0_49] : memref<8x136xf32, #tpu.memory_space<vmem>>, vector<8x136xf32>
    tpu.vector_store %arg18[%c0_48, %c0_49], %65 {strides = array<i32>} : memref<8x136xf32, #tpu.memory_space<vmem>>, vector<8x136xf32>,
    return
  }
  func.func @transform_0(%arg0: i32) -> (i32, i32) {
    %c0_i32 = arith.constant 0 : i32
    %c0_i32_0 = arith.constant 0 : i32
    return %arg0, %c0_i32 : i32, i32
  }
  func.func @transform_1(%arg0: i32) -> (i32, i32) {
    %c0_i32 = arith.constant 0 : i32
    %c0_i32_0 = arith.constant 0 : i32
    return %arg0, %c0_i32 : i32, i32
  }
  func.func @transform_2(%arg0: i32) -> (i32, i32) {
    %c0_i32 = arith.constant 0 : i32
    %c0_i32_0 = arith.constant 0 : i32
    %c0_i32_1 = arith.constant 0 : i32
    return %c0_i32, %c0_i32_0 : i32, i32
  }
  func.func @transform_3(%arg0: i32) -> (i32, i32) {
    %c0_i32 = arith.constant 0 : i32
    %c0_i32_0 = arith.constant 0 : i32
    %c0_i32_1 = arith.constant 0 : i32
    return %c0_i32, %c0_i32_0 : i32, i32
  }
  func.func @transform_4(%arg0: i32) -> (i32, i32) {
    %c0_i32 = arith.constant 0 : i32
    %c0_i32_0 = arith.constant 0 : i32
    %c0_i32_1 = arith.constant 0 : i32
    return %c0_i32, %c0_i32_0 : i32, i32
  }
  func.func @transform_5(%arg0: i32) -> (i32, i32) {
    %c0_i32 = arith.constant 0 : i32
    %c0_i32_0 = arith.constant 0 : i32
    %c0_i32_1 = arith.constant 0 : i32
    return %c0_i32, %c0_i32_0 : i32, i32
  }
  func.func @transform_6(%arg0: i32) -> (i32, i32) {
    %c0_i32 = arith.constant 0 : i32
    %c0_i32_0 = arith.constant 0 : i32
    %c0_i32_1 = arith.constant 0 : i32
    return %c0_i32, %c0_i32_0 : i32, i32
  }
  func.func @transform_7(%arg0: i32) -> (i32, i32) {
    %c0_i32 = arith.constant 0 : i32
    %c0_i32_0 = arith.constant 0 : i32
    %c0_i32_1 = arith.constant 0 : i32
    return %c0_i32, %c0_i32_0 : i32, i32
  }
  func.func @transform_8(%arg0: i32) -> (i32, i32) {
    %c0_i32 = arith.constant 0 : i32
    %c0_i32_0 = arith.constant 0 : i32
    %c0_i32_1 = arith.constant 0 : i32
    return %c0_i32, %c0_i32_0 : i32, i32
  }
  func.func @transform_9(%arg0: i32) -> (i32, i32) {
    %c0_i32 = arith.constant 0 : i32
    %c0_i32_0 = arith.constant 0 : i32
    %c0_i32_1 = arith.constant 0 : i32
    return %c0_i32, %c0_i32_0 : i32, i32
  }
  func.func @transform_10(%arg0: i32) -> (i32, i32) {
    %c0_i32 = arith.constant 0 : i32
    %c0_i32_0 = arith.constant 0 : i32
    %c0_i32_1 = arith.constant 0 : i32
    return %c0_i32, %c0_i32_0 : i32, i32
  }
  func.func @transform_11(%arg0: i32) -> (i32, i32) {
    %c0_i32 = arith.constant 0 : i32
    %c0_i32_0 = arith.constant 0 : i32
    %c0_i32_1 = arith.constant 0 : i32
    return %c0_i32, %c0_i32_0 : i32, i32
  }
  func.func @transform_12(%arg0: i32) -> (i32, i32) {
    %c0_i32 = arith.constant 0 : i32
    %c0_i32_0 = arith.constant 0 : i32
    %c0_i32_1 = arith.constant 0 : i32
    return %c0_i32, %c0_i32_0 : i32, i32
  }
  func.func @transform_13(%arg0: i32) -> (i32, i32) {
    %c0_i32 = arith.constant 0 : i32
    %c0_i32_0 = arith.constant 0 : i32
    %c0_i32_1 = arith.constant 0 : i32
    return %c0_i32, %c0_i32_0 : i32, i32
  }
  func.func @transform_14(%arg0: i32) -> (i32, i32) {
    %c0_i32 = arith.constant 0 : i32
    %c0_i32_0 = arith.constant 0 : i32
    %c0_i32_1 = arith.constant 0 : i32
    return %c0_i32, %c0_i32_0 : i32, i32
  }
  func.func @transform_15(%arg0: i32) -> (i32, i32) {
    %c0_i32 = arith.constant 0 : i32
    %c0_i32_0 = arith.constant 0 : i32
    %c0_i32_1 = arith.constant 0 : i32
    return %c0_i32, %c0_i32_0 : i32, i32
  }
  func.func @transform_16(%arg0: i32) -> (i32, i32) {
    %c0_i32 = arith.constant 0 : i32
    %c0_i32_0 = arith.constant 0 : i32
    %c0_i32_1 = arith.constant 0 : i32
    return %c0_i32, %c0_i32_0 : i32, i32
  }
  func.func @transform_17(%arg0: i32) -> (i32, i32) {
    %c0_i32 = arith.constant 0 : i32
    %c0_i32_0 = arith.constant 0 : i32
    return %arg0, %c0_i32 : i32, i32
  }
}

</mosaic_0001>

<bundles_post_ra>
// kernel: mmd_cvae_forward.1
= control target key start
LH: loop header
LB: loop body
LE: loop exit
PB: predicated region body
PF: predicated region fallthrough
CT: control target
= control target key end

     0   :  { %s1784_s24 = smov 0   ;;  %s2098_s0 = inlined_call_operand.vmem [shape: f32[16,128], index: 0, kind: input, shape index: {}]   ;;  %s2099_s1 = inlined_call_operand.vmem [shape: f32[16,64], index: 1, kind: input, shape index: {}]   ;;  %s2100_s2 = inlined_call_operand.vmem [shape: bf16[128,128], index: 2, kind: input, shape index: {}]   ;;  %s2101_s3 = inlined_call_operand.vmem [shape: f32[1,128], index: 3, kind: input, shape index: {}]   ;;  %s2102_s4 = inlined_call_operand.vmem [shape: bf16[128,256], index: 4, kind: input, shape index: {}]   ;;  %s2103_s5 = inlined_call_operand.vmem [shape: f32[1,256], index: 5, kind: input, shape index: {}]   ;;  %s2104_s6 = inlined_call_operand.vmem [shape: bf16[256,8], index: 6, kind: input, shape index: {}]   ;;  %s2105_s7 = inlined_call_operand.vmem [shape: f32[1,8], index: 7, kind: input, shape index: {}]   ;;  %s2106_s8 = inlined_call_operand.vmem [shape: bf16[64,128], index: 8, kind: input, shape index: {}]   ;;  %s2107_s9 = inlined_call_operand.vmem [shape: bf16[8,128], index: 9, kind: input, shape index: {}]   ;;  %s2108_s10 = inlined_call_operand.vmem [shape: f32[1,128], index: 10, kind: input, shape index: {}]   ;;  %s2109_s11 = inlined_call_operand.vmem [shape: bf16[128,128], index: 11, kind: input, shape index: {}]   ;;  %s2110_s12 = inlined_call_operand.vmem [shape: f32[1,128], index: 12, kind: input, shape index: {}]   ;;  %s2111_s13 = inlined_call_operand.vmem [shape: bf16[128,64], index: 13, kind: input, shape index: {}]   ;;  %s2112_s14 = inlined_call_operand.vmem [shape: f32[1,64], index: 14, kind: input, shape index: {}]   ;;  %s2113_s15 = inlined_call_operand.vmem [shape: bf16[64,64], index: 15, kind: input, shape index: {}]   ;;  %s2114_s16 = inlined_call_operand.vmem [shape: f32[1,64], index: 16, kind: input, shape index: {}]   ;;  %s2115_s17 = inlined_call_operand.vmem [shape: f32[16,136], index: 17, kind: output, shape index: {}]  }
   0x1   :  { %2116 = sst [smem:[#allocation2_spill]] %s2098_s0 }
   0x2   :  { %2117 = sst [smem:[#allocation3_spill]] %s2099_s1 }
   0x3 LB: > { %s1331_s25 = sadd.s32 4294967295, %s1691_s24   ;;  %p1335_p0 = scmp.ge.s32.totalorder %s1691_s24, 1  ;;  %s1691_s24 = sphi %s1784_s24, %s27_s24  }
   0x4   : > { %p495_p1 = scmp.lt.s32.totalorder %s1691_s24, 3 }
   0x6   : > { %p496_p2 = pnand %p1335_p0, %p495_p1 }
   0x7   : > { %p1842_p3 = scmp.lt.s32.totalorder (!%p496_p2), %s1331_s25, 1  ;;  %s2119_s18 = sld [smem:[#allocation2_spill]] (!%p496_p2) }
   0x8   : > { %499 = sbr.rel (%p496_p2) target bundleno = 1132 (0x46c), region = 88  ;;  %s2120_s19 = sld [smem:[#allocation3_spill]] (!%p496_p2) }
   0xd   : > { %v1609_v0 = vld [vmem:[%s2100_s2 + $0x38] sm:$0xff]  ;;  %v1608_v1 = vld [vmem:[%s2100_s2 + $0x30] sm:$0xff]  ;;  %v1422_v8 = vld [vmem:[%s2102_s4 + $0x60] sm:$0xf]  ;;  %s2122_s25 = smov (!%p1842_p3, %s1331_s25), 1  ;;  %vm956_vm0 = vcmask 1043456  }
   0xe   : > { %634 = vmatpush.bf16.msra.mxu0 %v1609_v0  ;;  %v1430_v2 = vld [vmem:[%s2102_s4 + $0x70] sm:$0xf]  ;;  %v1625_v3 = vld [vmem:[%s2102_s4 + $0x74] sm:$0xf0]  ;;  %v1624_v4 = vld [vmem:[%s2102_s4 + $0x74] sm:$0xf] }
   0xf   : > { %v1432_v5 = vld [vmem:[%s2102_s4 + $0x78] sm:$0xf0]  ;;  %v1431_v6 = vor.u32 %v1625_v3, %v1430_v2  ;;  %v1623_v9 = vld [vmem:[%s2102_s4 + $0x64] sm:$0xf0]  ;;  %v1622_v10 = vld [vmem:[%s2102_s4 + $0x64] sm:$0xf] }
  0x10   : > { %v1435_v7 = vor.u32 %v1624_v4, %v1432_v5  ;;  %v1424_v11 = vld [vmem:[%s2102_s4 + $0x68] sm:$0xf0]  ;;  %v1423_v13 = vor.u32 %v1623_v9, %v1422_v8  ;;  %v1414_v15 = vld [vmem:[%s2102_s4 + $0x50] sm:$0xf]  ;;  %v1621_v16 = vld [vmem:[%s2102_s4 + $0x54] sm:$0xf0] }
  0x11   : > { %v1607_v12 = vld [vmem:[%s2100_s2 + $0x28] sm:$0xff]  ;;  %751 = vmatpush.bf16.msra.mxu1 %v1431_v6  ;;  %v1427_v14 = vor.u32 %v1622_v10, %v1424_v11  ;;  %v1620_v17 = vld [vmem:[%s2102_s4 + $0x54] sm:$0xf]  ;;  %v1416_v18 = vld [vmem:[%s2102_s4 + $0x58] sm:$0xf0]  ;;  %v1415_v20 = vor.u32 %v1621_v16, %v1414_v15  ;;  %s1336_s30 = sshll.u32 %s2122_s25, 3 }
  0x12   : > { %635 = vmatpush.bf16.msra.mxu0 %v1608_v1  ;;  %764 = vmatpush.bf16.msra.mxu2 %v1435_v7  ;;  %v1606_v19 = vld [vmem:[%s2100_s2 + $0x20] sm:$0xff]  ;;  %v1419_v22 = vor.u32 %v1620_v17, %v1416_v18  ;;  %v1619_v23 = vld [vmem:[%s2102_s4 + $0x44] sm:$0xf0]  ;;  %v1408_v25 = vld [vmem:[%s2102_s4 + $0x48] sm:$0xf0]  ;;  %s553_s28 = scalar_lea.vmem %s2119_s18, %s1336_s30  ;;  %s557_s1 = scalar_lea.vmem %s2120_s19, %s1336_s30  ;;  %vm997_vm1 = vcmask 523264  }
  0x13   : > { %v1406_v21 = vld [vmem:[%s2102_s4 + $0x40] sm:$0xf]  ;;  %v1618_v24 = vld [vmem:[%s2102_s4 + $0x44] sm:$0xf]  ;;  %v1605_v26 = vld [vmem:[%s2100_s2 + $0x18] sm:$0xff]  ;;  %s1601_s26 = sshll.u32 %s2122_s25, 4 }
  0x14   : > { %v1407_v27 = vor.u32 %v1619_v23, %v1406_v21  ;;  %v1411_v28 = vor.u32 %v1618_v24, %v1408_v25  ;;  %v1398_v29 = vld [vmem:[%s2102_s4 + $0x30] sm:$0xf]  ;;  %v1617_v30 = vld [vmem:[%s2102_s4 + $0x34] sm:$0xf0]  ;;  %v1616_v31 = vld [vmem:[%s2102_s4 + $0x34] sm:$0xf] }
  0x15   : > { %752 = vmatpush.bf16.msra.mxu1 %v1423_v13  ;;  %v1400_v32 = vld [vmem:[%s2102_s4 + $0x38] sm:$0xf0]  ;;  %v1604_v33 = vld [vmem:[%s2100_s2 + $0x10] sm:$0xff]  ;;  %v1399_v34 = vor.u32 %v1617_v30, %v1398_v29  ;;  %v1390_v36 = vld [vmem:[%s2102_s4 + $0x20] sm:$0xf]  ;;  %vm952_vm2 = vcmask 64512  }
  0x16   : > { %636 = vmatpush.bf16.msra.mxu0 %v1607_v12  ;;  %765 = vmatpush.bf16.msra.mxu2 %v1427_v14  ;;  %v1403_v35 = vor.u32 %v1616_v31, %v1400_v32  ;;  %v1615_v37 = vld [vmem:[%s2102_s4 + $0x24] sm:$0xf0]  ;;  %v1614_v38 = vld [vmem:[%s2102_s4 + $0x24] sm:$0xf]  ;;  %v1392_v39 = vld [vmem:[%s2102_s4 + $0x28] sm:$0xf0] }
  0x17   : > { %v1603_v40 = vld [vmem:[%s2100_s2 + $0x8] sm:$0xff]  ;;  %v1391_v41 = vor.u32 %v1615_v37, %v1390_v36  ;;  %v1395_v42 = vor.u32 %v1614_v38, %v1392_v39  ;;  %v1602_v43 = vld [vmem:[%s2100_s2] sm:$0xff]  ;;  %v1382_v46 = vld [vmem:[%s2102_s4 + $0x10] sm:$0xf] }
  0x18   : > { %v564_v44 = vld [vmem:[%s553_s28] sm:$0xff]  ;;  %v1613_v47 = vld [vmem:[%s2102_s4 + $0x14] sm:$0xf0]  ;;  %v1612_v48 = vld [vmem:[%s2102_s4 + $0x14] sm:$0xf]  ;;  %s2034_s28 = scalar_lea.vmem %s2115_s17, %s1601_s26  ;;  %s1693_s26 = smov 64  }
  0x19   : > { %753 = vmatpush.bf16.msra.mxu1 %v1415_v20  ;;  %v582_v45 = vpack.c.bf16 %v564_v44, %v564_v44  ;;  %v1383_v49 = vor.u32 %v1613_v47, %v1382_v46  ;;  %v1384_v50 = vld [vmem:[%s2102_s4 + $0x18] sm:$0xf0]  ;;  %v1374_v52 = vld [vmem:[%s2102_s4] sm:$0xf]  ;;  %v1611_v53 = vld [vmem:[%s2102_s4 + $0x4] sm:$0xf0] }
  0x1a   : > { %637 = vmatpush.bf16.msra.mxu0 %v1606_v19  ;;  %766 = vmatpush.bf16.msra.mxu2 %v1419_v22  ;;  %v1387_v51 = vor.u32 %v1612_v48, %v1384_v50  ;;  %v1610_v54 = vld [vmem:[%s2102_s4 + $0x4] sm:$0xf]  ;;  %v1375_v55 = vor.u32 %v1611_v53, %v1374_v52  ;;  %v1376_v56 = vld [vmem:[%s2102_s4 + $0x8] sm:$0xf0]  ;;  %v1633_v58 = vld [vmem:[%s2104_s6 + $0x38] sm:$0xff] }
  0x1b   : > { %v1379_v57 = vor.u32 %v1610_v54, %v1376_v56  ;;  %v1641_v59 = vld [vmem:[%s2104_s6 + $0x78] sm:$0xff]  ;;  %913 = vmatpush.bf16.msra.mxu3 %v1633_v58  ;;  %v1632_v60 = vld [vmem:[%s2104_s6 + $0x30] sm:$0xff]  ;;  %v1631_v62 = vld [vmem:[%s2104_s6 + $0x28] sm:$0xff] }
  0x1c   : > { %v1640_v61 = vld [vmem:[%s2104_s6 + $0x70] sm:$0xff]  ;;  %v1639_v63 = vld [vmem:[%s2104_s6 + $0x68] sm:$0xff]  ;;  %v1630_v0 = vld [vmem:[%s2104_s6 + $0x20] sm:$0xff] }
  0x1d   : > { %754 = vmatpush.bf16.msra.mxu1 %v1407_v27  ;;  %v1638_v1 = vld [vmem:[%s2104_s6 + $0x60] sm:$0xff]  ;;  %v1629_v2 = vld [vmem:[%s2104_s6 + $0x18] sm:$0xff]  ;;  %v1628_v4 = vld [vmem:[%s2104_s6 + $0x10] sm:$0xff] }
  0x1e   : > { %638 = vmatpush.bf16.msra.mxu0 %v1605_v26  ;;  %767 = vmatpush.bf16.msra.mxu2 %v1411_v28  ;;  %v1637_v3 = vld [vmem:[%s2104_s6 + $0x58] sm:$0xff]  ;;  %v1675_v5 = vld [vmem:[%s2101_s3] ss:$0 sm:$0xff]  ;;  %v1627_v11 = vld [vmem:[%s2104_s6 + $0x8] sm:$0xff] }
  0x1f   : > { %914 = vmatpush.bf16.msra.mxu3 %v1632_v60  ;;  %v1636_v12 = vld [vmem:[%s2104_s6 + $0x50] sm:$0xff]  ;;  %v1626_v13 = vld [vmem:[%s2104_s6] sm:$0xff]  ;;  %v1635_v14 = vld [vmem:[%s2104_s6 + $0x48] sm:$0xff] }
  0x20   : > { %v1634_v15 = vld [vmem:[%s2104_s6 + $0x40] sm:$0xff]  ;;  %v1645_v16 = vld [vmem:[%s2106_s8 + $0x18] sm:$0xff]  ;;  %v1644_v18 = vld [vmem:[%s2106_s8 + $0x10] sm:$0xff] }
  0x21   : > { %755 = vmatpush.bf16.msra.mxu1 %v1399_v34  ;;  %v948_v17 = vld [vmem:[%s2107_s9] sm:$0xf]  ;;  %v1643_v20 = vld [vmem:[%s2106_s8 + $0x8] sm:$0xff]  ;;  %v1653_v37 = vld [vmem:[%s2109_s11 + $0x38] sm:$0xff] }
  0x22   : > { %639 = vmatpush.bf16.msra.mxu0 %v1604_v33  ;;  %768 = vmatpush.bf16.msra.mxu2 %v1403_v35  ;;  %v958_v19 = vsel %vm956_vm0, %v948_v17, 0  ;;  %v1998_v21 = vld [vmem:[%s557_s1] sm:$0xff]  ;;  %v1652_v38 = vld [vmem:[%s2109_s11 + $0x30] sm:$0xff]  ;;  %v1651_v39 = vld [vmem:[%s2109_s11 + $0x28] sm:$0xff] }
  0x23   : > { %915 = vmatpush.bf16.msra.mxu3 %v1631_v62  ;;  %v1642_v22 = vld [vmem:[%s2106_s8] sm:$0xff]  ;;  %v950_v24 = vpack.c.bf16 %v1998_v21, %v1998_v21  ;;  %v1647_v53 = vld [vmem:[%s2109_s11 + $0x8] sm:$0xff]  ;;  %v1660_v56 = vld [vmem:[%s2111_s13 + $0x30] sm:$0xff] }
  0x24   : > { %v664_v23 = vld [vmem:[%s2103_s5] sm:$0x3]  ;;  %v1656_v60 = vld [vmem:[%s2111_s13 + $0x10] sm:$0xff] }
  0x25   : > { %756 = vmatpush.bf16.msra.mxu1 %v1391_v41  ;;  %v667_v25 = vperm.slane %v664_v23, 0  ;;  %v668_v29 = vperm.slane %v664_v23, 1  ;;  %v1649_v41 = vld [vmem:[%s2109_s11 + $0x18] sm:$0xff]  ;;  %v1676_v44 = vld [vmem:[%s2105_s7] ss:$0 sm:$0xff] }
  0x26   : > { %640 = vmatpush.bf16.msra.mxu0 %v1603_v40  ;;  %769 = vmatpush.bf16.msra.mxu2 %v1395_v42  ;;  %v1650_v40 = vld [vmem:[%s2109_s11 + $0x20] sm:$0xff] }
  0x27   : > { %916 = vmatpush.bf16.msra.mxu3 %v1630_v0  ;;  %v1646_v54 = vld [vmem:[%s2109_s11] sm:$0xff] }
  0x28   : > { %v1658_v58 = vld [vmem:[%s2111_s13 + $0x20] sm:$0xff] }
  0x29   : > { %757 = vmatpush.bf16.msra.mxu1 %v1383_v49  ;;  %v1680_v23 = vld [vmem:[%s2114_s16] ss:$0 sm:$0xff] }
  0x2a   : > { %641 = vmatpush.bf16.msra.mxu0 %v1602_v43  ;;  %770 = vmatpush.bf16.msra.mxu2 %v1387_v51  ;;  %v1648_v43 = vld [vmem:[%s2109_s11 + $0x10] sm:$0xff] }
  0x2b   : > { %917 = vmatpush.bf16.msra.mxu3 %v1629_v2 }
  0x2d   : > { %642 = vmatmul.bf16.vlgmr.msra.gmra.mxu0 %v582_v45  ;;  %758 = vmatpush.bf16.msra.mxu1 %v1375_v55  ;;  %v1661_v55 = vld [vmem:[%s2111_s13 + $0x38] sm:$0xff] }
  0x2e   : > { %771 = vmatpush.bf16.msra.mxu2 %v1379_v57  ;;  %926 = vmatpush.bf16.msrb.mxu0 %v1641_v59  ;;  %v1659_v57 = vld [vmem:[%s2111_s13 + $0x28] sm:$0xff]  ;;  %v1657_v59 = vld [vmem:[%s2111_s13 + $0x18] sm:$0xff] }
  0x2f   : > { %918 = vmatpush.bf16.msra.mxu3 %v1628_v4  ;;  %v1655_v4 = vld [vmem:[%s2111_s13 + $0x8] sm:$0xff] }
  0x31   : > { %967 = vmatpush.bf16.msrb.mxu1 %v958_v19 }
  0x32   : > { %927 = vmatpush.bf16.msrb.mxu0 %v1640_v61  ;;  %1005 = vmatpush.bf16.msrb.mxu2 %v1645_v16  ;;  %v1677_v61 = vld [vmem:[%s2108_s10] ss:$0 sm:$0xff] }
  0x33   : > { %919 = vmatpush.bf16.msra.mxu3 %v1627_v11  ;;  %v1679_v16 = vld [vmem:[%s2112_s14] ss:$0 sm:$0xff] }
  0x36   : > { %928 = vmatpush.bf16.msrb.mxu0 %v1639_v63  ;;  %1006 = vmatpush.bf16.msrb.mxu2 %v1644_v18 }
  0x37   : > { %920 = vmatpush.bf16.msra.mxu3 %v1626_v13 }
  0x3a   : > { %929 = vmatpush.bf16.msrb.mxu0 %v1638_v1  ;;  %1007 = vmatpush.bf16.msrb.mxu2 %v1643_v20 }
  0x3b   : > { %1088 = vmatpush.bf16.msrb.mxu3 %v1653_v37 }
  0x3e   : > { %930 = vmatpush.bf16.msrb.mxu0 %v1637_v3  ;;  %1008 = vmatpush.bf16.msrb.mxu2 %v1642_v22 }
  0x3f   : > { %1089 = vmatpush.bf16.msrb.mxu3 %v1652_v38 }
  0x42   : > { %931 = vmatpush.bf16.msrb.mxu0 %v1636_v12 }
  0x43   : > { %1090 = vmatpush.bf16.msrb.mxu3 %v1651_v39 }
  0x46   : > { %932 = vmatpush.bf16.msrb.mxu0 %v1635_v14 }
  0x47   : > { %1091 = vmatpush.bf16.msrb.mxu3 %v1650_v40 }
  0x4a   : > { %933 = vmatpush.bf16.msrb.mxu0 %v1634_v15  ;;  %v1662_v15 = vld [vmem:[%s2113_s15] sm:$0xff] }
  0x4b   : > { %1092 = vmatpush.bf16.msrb.mxu3 %v1649_v41 }
  0x4f   : > { %1093 = vmatpush.bf16.msrb.mxu3 %v1648_v43 }
  0x53   : > { %1094 = vmatpush.bf16.msrb.mxu3 %v1647_v53 }
  0x57   : > { %1095 = vmatpush.bf16.msrb.mxu3 %v1646_v54 }
  0xaa   : > { %v643_v6 = vpop.f32.mrf.mxu0 }
  0xab   : > { %v644_v7 = vadd.f32 %v1675_v5, %v643_v6  ;;  %v1654_v5 = vld [vmem:[%s2111_s13] sm:$0xff]  ;;  %v1665_v6 = vld [vmem:[%s2113_s15 + $0x18] sm:$0xff] }
  0xad   : > { %v647_v8 = vmax.f32 %v644_v7, 0.0  ;;  %v1664_v7 = vld [vmem:[%s2113_s15 + $0x10] sm:$0xff] }
  0xaf   : > { %v665_v9 = vpack.c.bf16 %v647_v8, %v647_v8  ;;  %v1663_v8 = vld [vmem:[%s2113_s15 + $0x8] sm:$0xff] }
  0xb1   : > { %759 = vmatmul.bf16.vlgmr.msra.gmra.mxu1 %v665_v9  ;;  %772 = vmatmul.bf16.vlgmr.msra.gmra.mxu2 %v665_v9  ;;  %v1678_v9 = vld [vmem:[%s2110_s12] ss:$0 sm:$0xff] }
  0xb2   : > { %v645_v10 = vpop.f32.mrf.mxu0  ;;  %1171 = vmatpush.bf16.msra.mxu1 %v1661_v55  ;;  %1229 = vmatpush.bf16.msra.mxu2 %v1665_v6 }
  0xb6   : > { %1172 = vmatpush.bf16.msra.mxu1 %v1660_v56  ;;  %1230 = vmatpush.bf16.msra.mxu2 %v1664_v7 }
  0xba   : > { %1173 = vmatpush.bf16.msra.mxu1 %v1659_v57  ;;  %1231 = vmatpush.bf16.msra.mxu2 %v1663_v8 }
  0xbe   : > { %1174 = vmatpush.bf16.msra.mxu1 %v1658_v58  ;;  %1232 = vmatpush.bf16.msra.mxu2 %v1662_v15 }
  0xc1   : > { %1517 = vmatmul.msk.bf16.vlgmr.msrb.gmra.mxu2 %vm997_vm1, %v950_v24 }
  0xc2   : > { %1175 = vmatpush.bf16.msra.mxu1 %v1657_v59 }
  0xc6   : > { %1176 = vmatpush.bf16.msra.mxu1 %v1656_v60 }
  0xca   : > { %1177 = vmatpush.bf16.msra.mxu1 %v1655_v4 }
  0xce   : > { %1178 = vmatpush.bf16.msra.mxu1 %v1654_v5 }
 0x12e   : > { %v760_v26 = vpop.f32.mrf.mxu1 }
 0x12f   : > { %v761_v27 = vadd.f32 %v760_v26, %v667_v25 }
 0x131   : > { %v777_v28 = vmax.f32 %v761_v27, 0.0 }
 0x133   : > { %v812_v30 = vpack.c.bf16 %v777_v28, %v777_v28 }
 0x134   : > { %v773_v31 = vpop.f32.mrf.mxu2 }
 0x135   : > { %v774_v32 = vadd.f32 %v773_v31, %v668_v29  ;;  %921 = vmatmul.bf16.vlgmr.msra.gmra.mxu3 %v812_v30 }
 0x136   : > { %v762_v33 = vpop.f32.mrf.mxu1 }
 0x137   : > { %v778_v34 = vmax.f32 %v774_v32, 0.0 }
 0x139   : > { %v813_v35 = vpack.c.bf16 %v778_v34, %v778_v34 }
 0x13b   : > { %934 = vmatmul.bf16.vlgmr.msrb.gmra.mxu0 %v813_v35 }
 0x13c   : > { %v775_v36 = vpop.f32.mrf.mxu2 }
 0x144   : > { %v1010_v42 = vpop.f32.mrf.mxu2 }
 0x14c   : > { %v1012_v48 = vpop.f32.mrf.mxu2 }
 0x1b8   : > { %v922_v45 = vpop.f32.mrf.mxu3  ;;  %v935_v46 = vpop.f32.mrf.mxu0 }
 0x1b9   : > { %v923_v47 = vadd.f32 %v1676_v44, %v922_v45 }
 0x1bb   : > { %v936_v49 = vadd.f32 %v935_v46, %v923_v47 }
 0x1bd   : > { %v951_v50 = vpack.c.bf16 %v936_v49, %v936_v49  ;;  %1263 = vst.msk [vmem:[%s2034_s28 + $0x8] sm:$0xff] %vm952_vm2, %v936_v49 }
 0x1bf   : > { %1500 = vmatmul.msk.bf16.vlgmr.msrb.gmra.mxu1 %vm952_vm2, %v951_v50 }
 0x1c0   : > { %v924_v51 = vpop.f32.mrf.mxu3  ;;  %v937_v52 = vpop.f32.mrf.mxu0 }
 0x23c   : > { %v969_v62 = vpop.f32.mrf.mxu1 }
 0x23d   : > { %v1011_v63 = vadd.f32 %v1010_v42, %v969_v62 }
 0x23f   : > { %v1017_v0 = vadd.f32 %v1677_v61, %v1011_v63 }
 0x241   : > { %v1018_v1 = vmax.f32 %v1017_v0, 0.0 }
 0x243   : > { %v1036_v2 = vpack.c.bf16 %v1018_v1, %v1018_v1 }
 0x244   : > { %v971_v3 = vpop.f32.mrf.mxu1 }
 0x245   : > { %1096 = vmatmul.bf16.vlgmr.msrb.gmra.mxu3 %v1036_v2 }
 0x2c8   : > { %v1097_v10 = vpop.f32.mrf.mxu3 }
 0x2c9   : > { %v1098_v11 = vadd.f32 %v1678_v9, %v1097_v10 }
 0x2cb   : > { %v1101_v12 = vmax.f32 %v1098_v11, 0.0 }
 0x2cd   : > { %v1119_v13 = vpack.c.bf16 %v1101_v12, %v1101_v12 }
 0x2cf   : > { %1179 = vmatmul.bf16.vlgmr.msra.gmra.mxu1 %v1119_v13 }
 0x2d0   : > { %v1099_v14 = vpop.f32.mrf.mxu3 }
 0x34c   : > { %v1180_v17 = vpop.f32.mrf.mxu1 }
 0x34d   : > { %v1181_v18 = vadd.f32 %v1679_v16, %v1180_v17 }
 0x34f   : > { %v1184_v19 = vmax.f32 %v1181_v18, 0.0 }
 0x351   : > { %v1194_v20 = vpack.c.bf16 %v1184_v19, %v1184_v19 }
 0x353   : > { %1598 = vmatmul.msk.bf16.vlgmr.msra.gmra.mxu2 %vm997_vm1, %v1194_v20 }
 0x354   : > { %v1182_v22 = vpop.f32.mrf.mxu1 }
 0x3d6   : > { %v1234_v24 = vpop.f32.mrf.mxu2 }
 0x3d7   : > { %v1235_v25 = vadd.f32 %v1680_v23, %v1234_v24 }
 0x3d9   : > { %v1238_v26 = vsub.f32 0.0, %v1235_v25 }
 0x3db   : > { %v1239_v27 = vmul.f32 1.442695, %v1238_v26 }
 0x3dd   : > { %1681 = vpow2.f32 %v1239_v27 }
 0x3de   : > { %v1236_v28 = vpop.f32.mrf.mxu2 }
 0x3e3   : > { %v1682_v29 = vpop.eup %1681 }
 0x3e4   : > { %v1241_v30 = vadd.f32 1.0, %v1682_v29 }
 0x3e6   : > { %1683 = vrcp.f32 %v1241_v30  ;;  %v1253_v34 = vand.u32 2147483648, %v1241_v30  ;;  %v1251_v36 = vand.u32 2147483647, %v1241_v30  ;;  %vm1247_vm4 = vweird.f32 %v1241_v30 }
 0x3e8   : > { %v1254_v38 = vor.u32 1.1754944e-38, %v1253_v34  ;;  %vm1252_vm6 = vcmp.eq.f32.partialorder %v1251_v36, 8.507059e+37 }
 0x3ec   : > { %v1684_v31 = vpop.eup %1683 }
 0x3ed   : > { %v1243_v32 = vmul.f32 %v1684_v31, %v1241_v30  ;;  %vm1248_vm3 = vweird.f32 %v1684_v31 }
 0x3ee   : > { %vm1249_vm5 = vmor %vm1247_vm4, %vm1248_vm3 }
 0x3ef   : > { %v1244_v33 = vsub.f32 1.0, %v1243_v32 }
 0x3f1   : > { %v1245_v35 = vmul.f32 %v1684_v31, %v1244_v33 }
 0x3f3   : > { %v1246_v37 = vadd.f32 %v1684_v31, %v1245_v35 }
 0x3f5   : > { %v1250_v39 = vsel %vm1249_vm5, %v1684_v31, %v1246_v37 }
 0x3f6   : > { %v1255_v40 = vsel %vm1252_vm6, %v1254_v38, %v1250_v39 }
 0x3f7   : > { %1258 = vrot.lane.b32.xlu0 %v1255_v40, %s1693_s26 }
 0x469   : > { %v1259_v41 = vpop.permute.xlu0 %1258 }
 0x46a   : > { %v1261_v42 = vsel %vm997_vm1, %v1998_v21, %v1259_v41 }
 0x46b   : > { %1262 = vst [vmem:[%s2034_s28] sm:$0xff] %v1261_v42 }
 0x46c PF: > { %s27_s24 = sadd.s32 1, %s1691_s24  }
 0x46d   : > { %p24_p4 = scmp.ge.s32.totalorder %s27_s24, 4  }
 0x46f   :  { %26 = sbr.rel (!%p24_p4) target bundleno = 3 (0x3), region = 121 }

</bundles_post_ra>
